<compile_context>
chip_gen: v6e
topology: v6e:2x2x1
jax: 0.10.0
libtpu: 0.0.40
codegen_flags: <defaults>
</compile_context>

<pallas_src>
import functools

import jax
import jax.numpy as jnp
from jax.experimental import pallas as pl
from jax.experimental.pallas import tpu as pltpu


LANE = 128  # every parameter block / activation segment is padded to 128 lanes

# ---- parameter-slab row layout (all blocks padded to LANE rows x LANE cols) ----
ROW_W1 = (0 * LANE, 1 * LANE, 2 * LANE)   # encoder first-linear weights (text, audio, video)
ROW_W2 = (3 * LANE, 4 * LANE, 5 * LANE)   # encoder second-linear weights
ROW_WC = (6 * LANE, 7 * LANE, 8 * LANE)   # folded classifier weights (gamma & fusion-w absorbed)
ROW_BIAS = 9 * LANE                       # 8-row bias tile
ROW_B1 = (ROW_BIAS + 0, ROW_BIAS + 1, ROW_BIAS + 2)   # encoder first-linear biases
ROW_B2 = (ROW_BIAS + 3, ROW_BIAS + 4, ROW_BIAS + 5)   # encoder second-linear biases
ROW_BC = ROW_BIAS + 6                                  # folded classifier bias (beta absorbed)
PARAM_ROWS = ROW_BIAS + 8                              # 1160 rows (multiple of 8)


# ----------------------------------------------------------------------------- kernel

def late_fusion_kernel(x_ref, p_ref, o_ref, *, out_dim):
    """Fully fused LateFusionModel forward.

    x_ref : (B_pad, 3*LANE) f32 — [text | audio | video], each zero-padded to 128 lanes
    p_ref : (PARAM_ROWS, LANE) f32 — packed, tile-aligned parameter slab (see layout above)
    o_ref : (B_pad, LANE) f32 — lane-dense padded logits; first num_classes lanes valid
    """
    # Lane-validity mask for LayerNorm over the first `out_dim` lanes (same for all modalities).
    lane = jax.lax.broadcasted_iota(jnp.int32, (1, LANE), 1)
    ln_mask = (lane < out_dim).astype(jnp.float32)
    inv_d = 1.0 / out_dim

    def encode(m):
        # Linear -> ReLU -> (Dropout = identity in eval) -> Linear -> LayerNorm (affine folded away)
        x = x_ref[:, m * LANE:(m + 1) * LANE]                       # (B, LANE)
        w1 = p_ref[ROW_W1[m]:ROW_W1[m] + LANE, :]                   # (LANE, LANE)
        b1 = p_ref[ROW_B1[m]:ROW_B1[m] + 1, :]                      # (1, LANE)
        w2 = p_ref[ROW_W2[m]:ROW_W2[m] + LANE, :]
        b2 = p_ref[ROW_B2[m]:ROW_B2[m] + 1, :]

        h = jnp.maximum(jnp.dot(x, w1, preferred_element_type=jnp.float32) + b1, 0.0)
        y = jnp.dot(h, w2, preferred_element_type=jnp.float32) + b2  # zero beyond out_dim lanes

        mean = jnp.sum(y, axis=-1, keepdims=True) * inv_d            # valid: padded lanes are 0
        diff = (y - mean) * ln_mask                                   # mask padded lanes exactly
        var = jnp.sum(diff * diff, axis=-1, keepdims=True) * inv_d   # biased variance (PyTorch)
        return diff * jax.lax.rsqrt(var + 1e-5)                      # padded lanes -> exactly 0

    # combined_logits = sum_m softmax(fw)_m * (LN_m(enc_m) @ Wc_m + bc_m)
    #                 = sum_m xnorm_m @ W'_m + b'         (fusion w, gamma, beta folded at init)
    acc = jnp.dot(encode(0), p_ref[ROW_WC[0]:ROW_WC[0] + LANE, :],
                  preferred_element_type=jnp.float32)
    acc = acc + jnp.dot(encode(1), p_ref[ROW_WC[1]:ROW_WC[1] + LANE, :],
                        preferred_element_type=jnp.float32)
    acc = acc + jnp.dot(encode(2), p_ref[ROW_WC[2]:ROW_WC[2] + LANE, :],
                        preferred_element_type=jnp.float32)
    o_ref[...] = acc + p_ref[ROW_BC:ROW_BC + 1, :]                    # full-tile unmasked store


# ----------------------------------------------------------------------------- model

class LateFusionModelPallas:
    """Pallas port of LateFusionModel (eval mode, frozen parameters)."""

    def __init__(self, key, *, text_dim=64, audio_dim=48, hidden_dim=64,
                 output_dim=32, num_classes=2):
        video_in_dim = 32                       # LateFusionModel hardcodes ModalityEncoder(32, ...)
        video_hidden = hidden_dim // 4
        assert max(text_dim, audio_dim, video_in_dim, hidden_dim, video_hidden,
                   output_dim, num_classes) <= LANE
        self.num_classes = num_classes
        self.output_dim = output_dim
        self.video_in_dim = video_in_dim

        self._key = key

        def nxt():
            self._key, sub = jax.random.split(self._key)
            return sub

        def linear(din, dout):
            w = jax.random.normal(nxt(), (din, dout), jnp.float32) * (din ** -0.5)
            b = jax.random.normal(nxt(), (1, dout), jnp.float32) * 0.01
            return w, b

        def encoder(din, dhid, dout):
            w1, b1 = linear(din, dhid)
            w2, b2 = linear(dhid, dout)
            gamma = 1.0 + 0.05 * jax.random.normal(nxt(), (1, dout), jnp.float32)
            beta = 0.05 * jax.random.normal(nxt(), (1, dout), jnp.float32)
            return (w1, b1, w2, b2, gamma, beta)

        # --- modality encoders (mirroring the reference module) ---
        text_p = encoder(text_dim, hidden_dim, output_dim)
        audio_p = encoder(audio_dim, hidden_dim, output_dim)
        video_p = encoder(video_in_dim, video_hidden, output_dim)

        # --- per-modality classifiers ---
        wc_t, bc_t = linear(output_dim, num_classes)
        wc_a, bc_a = linear(output_dim, num_classes)
        wc_v, bc_v = linear(output_dim, num_classes)

        # fusion_weights = Parameter(torch.ones(3) / 3); weights = softmax(fusion_weights)
        fusion_weights = jnp.full((3,), 1.0 / 3.0, jnp.float32)
        w = jax.nn.softmax(fusion_weights)

        # --- constant-fold fusion softmax + LayerNorm affine into classifier weights/bias ---
        # (valid because parameters are frozen at inference; re-fold on any weight update)
        def fold(enc_params, wc, bc, wm):
            _, _, _, _, gamma, beta = enc_params          # gamma/beta: (1, D)
            w_f = wm * (gamma.reshape(-1, 1) * wc)        # (D, C)
            b_f = wm * (beta @ wc + bc)                   # (1, C)
            return w_f, b_f

        wcf_t, bcf_t = fold(text_p, wc_t, bc_t, w[0])
        wcf_a, bcf_a = fold(audio_p, wc_a, bc_a, w[1])
        wcf_v, bcf_v = fold(video_p, wc_v, bc_v, w[2])
        b_fold = bcf_t + bcf_a + bcf_v                    # (1, C)

        # --- pack everything into one (8,128)-tile-aligned f32 parameter slab ---
        def pad_block(arr):    # -> (LANE, LANE)
            return jnp.pad(arr, ((0, LANE - arr.shape[0]), (0, LANE - arr.shape[1])))

        def pad_row(arr):      # (1, d) -> (1, LANE)
            return jnp.pad(arr, ((0, 0), (0, LANE - arr.shape[1])))

        (tw1, tb1, tw2, tb2, _, _) = text_p
        (aw1, ab1, aw2, ab2, _, _) = audio_p
        (vw1, vb1, vw2, vb2, _, _) = video_p

        bias_block = jnp.concatenate(
            [pad_row(tb1), pad_row(ab1), pad_row(vb1),
             pad_row(tb2), pad_row(ab2), pad_row(vb2),
             pad_row(b_fold),
             jnp.zeros((1, LANE), jnp.float32)], axis=0)          # (8, LANE)

        self.param_slab = jnp.concatenate(
            [pad_block(tw1), pad_block(aw1), pad_block(vw1),
             pad_block(tw2), pad_block(aw2), pad_block(vw2),
             pad_block(wcf_t), pad_block(wcf_a), pad_block(wcf_v),
             bias_block], axis=0)                                  # (PARAM_ROWS, LANE)
        assert self.param_slab.shape == (PARAM_ROWS, LANE)

    def __call__(self, text_embedding, audio_embedding, video_embedding):
        # ModalityEncoder mean-pools 3-D inputs when is_sequential=False.
        # TODO(synk): the is_sequential=True LSTM/GRU branch of ModalityEncoder is not used
        #             by LateFusionModel and is not implemented here.
        def pool(x):
            return jnp.mean(x, axis=1) if x.ndim == 3 else x

        text = pool(text_embedding)
        audio = pool(audio_embedding)
        video = pool(video_embedding)
        B = text.shape[0]
        B_pad = ((B + 7) // 8) * 8                       # full (8,128) sublane tiles

        def pad_act(x):                                  # zero-pad batch + lanes (free for dots)
            return jnp.pad(x, ((0, B_pad - x.shape[0]), (0, LANE - x.shape[1])))

        x_all = jnp.concatenate([pad_act(text), pad_act(audio), pad_act(video)], axis=1)

        out = pl.pallas_call(
            functools.partial(late_fusion_kernel, out_dim=self.output_dim),
            out_shape=jax.ShapeDtypeStruct((B_pad, LANE), jnp.float32),
            in_specs=[pl.BlockSpec(memory_space=pltpu.MemorySpace.VMEM),
                      pl.BlockSpec(memory_space=pltpu.MemorySpace.VMEM)],
            out_specs=pl.BlockSpec(memory_space=pltpu.MemorySpace.VMEM),
        )(x_all, self.param_slab)

        return out[:B, :self.num_classes]


# ----------------------------------------------------------------------------- main

if __name__ == "__main__":
    key = jax.random.PRNGKey(0)
    k_model, k_text, k_audio, k_video = jax.random.split(key, 4)

    B = 2
    TEXT_DIM, AUDIO_DIM = 64, 48
    HIDDEN_DIM, OUTPUT_DIM, NUM_CLASSES = 64, 32, 2

    model = LateFusionModelPallas(
        k_model,
        text_dim=TEXT_DIM, audio_dim=AUDIO_DIM,
        hidden_dim=HIDDEN_DIM, output_dim=OUTPUT_DIM, num_classes=NUM_CLASSES)

    text = jax.random.normal(k_text, (B, TEXT_DIM), jnp.float32)
    audio = jax.random.normal(k_audio, (B, AUDIO_DIM), jnp.float32)
    video = jax.random.normal(k_video, (B, model.video_in_dim), jnp.float32)

    logits = model(text, audio, video)
    jax.block_until_ready(logits)
    assert logits.shape == (B, NUM_CLASSES)
    print("KERNEL_OK")
</pallas_src>

<mosaic_0001>
module attributes {stable_mosaic.version = 11 : i64} {
  func.func @late_fusion_kernel(%arg0: memref<8x384xf32, #tpu.memory_space<vmem>>, %arg1: memref<1160x128xf32, #tpu.memory_space<vmem>>, %arg2: memref<8x128xf32, #tpu.memory_space<vmem>>) attributes {dimension_semantics = [], scalar_prefetch = 0 : i64, scratch_operands = 0 : i64, tpu.core_type = #tpu.core_type<tc>} {
    %0 = tpu.iota {dimensions = array<i32: 1>} : vector<1x128xi32>
    %c32_i32 = arith.constant 32 : i32
    %1 = vector.broadcast %c32_i32 : i32 to vector<1x128xi32>
    %2 = arith.cmpi slt, %0, %1 : vector<1x128xi32>
    %3 = arith.extui %2 : vector<1x128xi1> to vector<1x128xi32>
    %4 = arith.sitofp %3 : vector<1x128xi32> to vector<1x128xf32>
    %c0 = arith.constant 0 : index
    %c0_0 = arith.constant 0 : index
    %5 = vector.load %arg0[%c0, %c0_0] : memref<8x384xf32, #tpu.memory_space<vmem>>, vector<8x128xf32>
    %c0_1 = arith.constant 0 : index
    %c0_2 = arith.constant 0 : index
    %6 = vector.load %arg1[%c0_1, %c0_2] : memref<1160x128xf32, #tpu.memory_space<vmem>>, vector<128x128xf32>
    %c1152 = arith.constant 1152 : index
    %c0_3 = arith.constant 0 : index
    %7 = vector.load %arg1[%c1152, %c0_3] : memref<1160x128xf32, #tpu.memory_space<vmem>>, vector<1x128xf32>
    %c384 = arith.constant 384 : index
    %c0_4 = arith.constant 0 : index
    %8 = vector.load %arg1[%c384, %c0_4] : memref<1160x128xf32, #tpu.memory_space<vmem>>, vector<128x128xf32>
    %c1155 = arith.constant 1155 : index
    %c0_5 = arith.constant 0 : index
    %9 = vector.load %arg1[%c1155, %c0_5] : memref<1160x128xf32, #tpu.memory_space<vmem>>, vector<1x128xf32>
    %cst = arith.constant dense<0.000000e+00> : vector<8x128xf32>
    %10 = tpu.matmul %5, %6, %cst {dimension_numbers = #tpu.dot_dimension_numbers<[1], [0], [0], [1], [0, 0, 1, 1], [], []>} : vector<8x128xf32>, vector<128x128xf32>, vector<8x128xf32> -> vector<8x128xf32>
    %11 = vector.broadcast %7 : vector<1x128xf32> to vector<8x128xf32>
    %12 = arith.addf %10, %11 : vector<8x128xf32>
    %cst_6 = arith.constant 0.000000e+00 : f32
    %13 = vector.broadcast %cst_6 : f32 to vector<8x128xf32>
    %14 = arith.maximumf %12, %13 : vector<8x128xf32>
    %cst_7 = arith.constant dense<0.000000e+00> : vector<8x128xf32>
    %15 = tpu.matmul %14, %8, %cst_7 {dimension_numbers = #tpu.dot_dimension_numbers<[1], [0], [0], [1], [0, 0, 1, 1], [], []>} : vector<8x128xf32>, vector<128x128xf32>, vector<8x128xf32> -> vector<8x128xf32>
    %16 = vector.broadcast %9 : vector<1x128xf32> to vector<8x128xf32>
    %17 = arith.addf %15, %16 : vector<8x128xf32>
    %cst_8 = arith.constant dense<0.000000e+00> : vector<8xf32>
    %18 = vector.multi_reduction <add>, %17, %cst_8 [1] : vector<8x128xf32> to vector<8xf32>
    %19 = vector.shape_cast %18 : vector<8xf32> to vector<8x1xf32>
    %cst_9 = arith.constant 3.125000e-02 : f32
    %20 = vector.broadcast %cst_9 : f32 to vector<8x1xf32>
    %21 = arith.mulf %19, %20 : vector<8x1xf32>
    %22 = vector.broadcast %21 : vector<8x1xf32> to vector<8x128xf32>
    %23 = arith.subf %17, %22 : vector<8x128xf32>
    %24 = vector.broadcast %4 : vector<1x128xf32> to vector<8x128xf32>
    %25 = arith.mulf %23, %24 : vector<8x128xf32>
    %26 = arith.mulf %25, %25 : vector<8x128xf32>
    %cst_10 = arith.constant dense<0.000000e+00> : vector<8xf32>
    %27 = vector.multi_reduction <add>, %26, %cst_10 [1] : vector<8x128xf32> to vector<8xf32>
    %28 = vector.shape_cast %27 : vector<8xf32> to vector<8x1xf32>
    %cst_11 = arith.constant 3.125000e-02 : f32
    %29 = vector.broadcast %cst_11 : f32 to vector<8x1xf32>
    %30 = arith.mulf %28, %29 : vector<8x1xf32>
    %cst_12 = arith.constant 9.99999974E-6 : f32
    %31 = vector.broadcast %cst_12 : f32 to vector<8x1xf32>
    %32 = arith.addf %30, %31 : vector<8x1xf32>
    %33 = math.rsqrt %32 : vector<8x1xf32>
    %34 = vector.broadcast %33 : vector<8x1xf32> to vector<8x128xf32>
    %35 = arith.mulf %25, %34 : vector<8x128xf32>
    %c768 = arith.constant 768 : index
    %c0_13 = arith.constant 0 : index
    %36 = vector.load %arg1[%c768, %c0_13] : memref<1160x128xf32, #tpu.memory_space<vmem>>, vector<128x128xf32>
    %cst_14 = arith.constant dense<0.000000e+00> : vector<8x128xf32>
    %37 = tpu.matmul %35, %36, %cst_14 {dimension_numbers = #tpu.dot_dimension_numbers<[1], [0], [0], [1], [0, 0, 1, 1], [], []>} : vector<8x128xf32>, vector<128x128xf32>, vector<8x128xf32> -> vector<8x128xf32>
    %c0_15 = arith.constant 0 : index
    %c128 = arith.constant 128 : index
    %38 = vector.load %arg0[%c0_15, %c128] : memref<8x384xf32, #tpu.memory_space<vmem>>, vector<8x128xf32>
    %c128_16 = arith.constant 128 : index
    %c0_17 = arith.constant 0 : index
    %39 = vector.load %arg1[%c128_16, %c0_17] : memref<1160x128xf32, #tpu.memory_space<vmem>>, vector<128x128xf32>
    %c1153 = arith.constant 1153 : index
    %c0_18 = arith.constant 0 : index
    %40 = vector.load %arg1[%c1153, %c0_18] : memref<1160x128xf32, #tpu.memory_space<vmem>>, vector<1x128xf32>
    %c512 = arith.constant 512 : index
    %c0_19 = arith.constant 0 : index
    %41 = vector.load %arg1[%c512, %c0_19] : memref<1160x128xf32, #tpu.memory_space<vmem>>, vector<128x128xf32>
    %c1156 = arith.constant 1156 : index
    %c0_20 = arith.constant 0 : index
    %42 = vector.load %arg1[%c1156, %c0_20] : memref<1160x128xf32, #tpu.memory_space<vmem>>, vector<1x128xf32>
    %cst_21 = arith.constant dense<0.000000e+00> : vector<8x128xf32>
    %43 = tpu.matmul %38, %39, %cst_21 {dimension_numbers = #tpu.dot_dimension_numbers<[1], [0], [0], [1], [0, 0, 1, 1], [], []>} : vector<8x128xf32>, vector<128x128xf32>, vector<8x128xf32> -> vector<8x128xf32>
    %44 = vector.broadcast %40 : vector<1x128xf32> to vector<8x128xf32>
    %45 = arith.addf %43, %44 : vector<8x128xf32>
    %cst_22 = arith.constant 0.000000e+00 : f32
    %46 = vector.broadcast %cst_22 : f32 to vector<8x128xf32>
    %47 = arith.maximumf %45, %46 : vector<8x128xf32>
    %cst_23 = arith.constant dense<0.000000e+00> : vector<8x128xf32>
    %48 = tpu.matmul %47, %41, %cst_23 {dimension_numbers = #tpu.dot_dimension_numbers<[1], [0], [0], [1], [0, 0, 1, 1], [], []>} : vector<8x128xf32>, vector<128x128xf32>, vector<8x128xf32> -> vector<8x128xf32>
    %49 = vector.broadcast %42 : vector<1x128xf32> to vector<8x128xf32>
    %50 = arith.addf %48, %49 : vector<8x128xf32>
    %cst_24 = arith.constant dense<0.000000e+00> : vector<8xf32>
    %51 = vector.multi_reduction <add>, %50, %cst_24 [1] : vector<8x128xf32> to vector<8xf32>
    %52 = vector.shape_cast %51 : vector<8xf32> to vector<8x1xf32>
    %cst_25 = arith.constant 3.125000e-02 : f32
    %53 = vector.broadcast %cst_25 : f32 to vector<8x1xf32>
    %54 = arith.mulf %52, %53 : vector<8x1xf32>
    %55 = vector.broadcast %54 : vector<8x1xf32> to vector<8x128xf32>
    %56 = arith.subf %50, %55 : vector<8x128xf32>
    %57 = vector.broadcast %4 : vector<1x128xf32> to vector<8x128xf32>
    %58 = arith.mulf %56, %57 : vector<8x128xf32>
    %59 = arith.mulf %58, %58 : vector<8x128xf32>
    %cst_26 = arith.constant dense<0.000000e+00> : vector<8xf32>
    %60 = vector.multi_reduction <add>, %59, %cst_26 [1] : vector<8x128xf32> to vector<8xf32>
    %61 = vector.shape_cast %60 : vector<8xf32> to vector<8x1xf32>
    %cst_27 = arith.constant 3.125000e-02 : f32
    %62 = vector.broadcast %cst_27 : f32 to vector<8x1xf32>
    %63 = arith.mulf %61, %62 : vector<8x1xf32>
    %cst_28 = arith.constant 9.99999974E-6 : f32
    %64 = vector.broadcast %cst_28 : f32 to vector<8x1xf32>
    %65 = arith.addf %63, %64 : vector<8x1xf32>
    %66 = math.rsqrt %65 : vector<8x1xf32>
    %67 = vector.broadcast %66 : vector<8x1xf32> to vector<8x128xf32>
    %68 = arith.mulf %58, %67 : vector<8x128xf32>
    %c896 = arith.constant 896 : index
    %c0_29 = arith.constant 0 : index
    %69 = vector.load %arg1[%c896, %c0_29] : memref<1160x128xf32, #tpu.memory_space<vmem>>, vector<128x128xf32>
    %cst_30 = arith.constant dense<0.000000e+00> : vector<8x128xf32>
    %70 = tpu.matmul %68, %69, %cst_30 {dimension_numbers = #tpu.dot_dimension_numbers<[1], [0], [0], [1], [0, 0, 1, 1], [], []>} : vector<8x128xf32>, vector<128x128xf32>, vector<8x128xf32> -> vector<8x128xf32>
    %71 = arith.addf %37, %70 : vector<8x128xf32>
    %c0_31 = arith.constant 0 : index
    %c256 = arith.constant 256 : index
    %72 = vector.load %arg0[%c0_31, %c256] : memref<8x384xf32, #tpu.memory_space<vmem>>, vector<8x128xf32>
    %c256_32 = arith.constant 256 : index
    %c0_33 = arith.constant 0 : index
    %73 = vector.load %arg1[%c256_32, %c0_33] : memref<1160x128xf32, #tpu.memory_space<vmem>>, vector<128x128xf32>
    %c1154 = arith.constant 1154 : index
    %c0_34 = arith.constant 0 : index
    %74 = vector.load %arg1[%c1154, %c0_34] : memref<1160x128xf32, #tpu.memory_space<vmem>>, vector<1x128xf32>
    %c640 = arith.constant 640 : index
    %c0_35 = arith.constant 0 : index
    %75 = vector.load %arg1[%c640, %c0_35] : memref<1160x128xf32, #tpu.memory_space<vmem>>, vector<128x128xf32>
    %c1157 = arith.constant 1157 : index
    %c0_36 = arith.constant 0 : index
    %76 = vector.load %arg1[%c1157, %c0_36] : memref<1160x128xf32, #tpu.memory_space<vmem>>, vector<1x128xf32>
    %cst_37 = arith.constant dense<0.000000e+00> : vector<8x128xf32>
    %77 = tpu.matmul %72, %73, %cst_37 {dimension_numbers = #tpu.dot_dimension_numbers<[1], [0], [0], [1], [0, 0, 1, 1], [], []>} : vector<8x128xf32>, vector<128x128xf32>, vector<8x128xf32> -> vector<8x128xf32>
    %78 = vector.broadcast %74 : vector<1x128xf32> to vector<8x128xf32>
    %79 = arith.addf %77, %78 : vector<8x128xf32>
    %cst_38 = arith.constant 0.000000e+00 : f32
    %80 = vector.broadcast %cst_38 : f32 to vector<8x128xf32>
    %81 = arith.maximumf %79, %80 : vector<8x128xf32>
    %cst_39 = arith.constant dense<0.000000e+00> : vector<8x128xf32>
    %82 = tpu.matmul %81, %75, %cst_39 {dimension_numbers = #tpu.dot_dimension_numbers<[1], [0], [0], [1], [0, 0, 1, 1], [], []>} : vector<8x128xf32>, vector<128x128xf32>, vector<8x128xf32> -> vector<8x128xf32>
    %83 = vector.broadcast %76 : vector<1x128xf32> to vector<8x128xf32>
    %84 = arith.addf %82, %83 : vector<8x128xf32>
    %cst_40 = arith.constant dense<0.000000e+00> : vector<8xf32>
    %85 = vector.multi_reduction <add>, %84, %cst_40 [1] : vector<8x128xf32> to vector<8xf32>
    %86 = vector.shape_cast %85 : vector<8xf32> to vector<8x1xf32>
    %cst_41 = arith.constant 3.125000e-02 : f32
    %87 = vector.broadcast %cst_41 : f32 to vector<8x1xf32>
    %88 = arith.mulf %86, %87 : vector<8x1xf32>
    %89 = vector.broadcast %88 : vector<8x1xf32> to vector<8x128xf32>
    %90 = arith.subf %84, %89 : vector<8x128xf32>
    %91 = vector.broadcast %4 : vector<1x128xf32> to vector<8x128xf32>
    %92 = arith.mulf %90, %91 : vector<8x128xf32>
    %93 = arith.mulf %92, %92 : vector<8x128xf32>
    %cst_42 = arith.constant dense<0.000000e+00> : vector<8xf32>
    %94 = vector.multi_reduction <add>, %93, %cst_42 [1] : vector<8x128xf32> to vector<8xf32>
    %95 = vector.shape_cast %94 : vector<8xf32> to vector<8x1xf32>
    %cst_43 = arith.constant 3.125000e-02 : f32
    %96 = vector.broadcast %cst_43 : f32 to vector<8x1xf32>
    %97 = arith.mulf %95, %96 : vector<8x1xf32>
    %cst_44 = arith.constant 9.99999974E-6 : f32
    %98 = vector.broadcast %cst_44 : f32 to vector<8x1xf32>
    %99 = arith.addf %97, %98 : vector<8x1xf32>
    %100 = math.rsqrt %99 : vector<8x1xf32>
    %101 = vector.broadcast %100 : vector<8x1xf32> to vector<8x128xf32>
    %102 = arith.mulf %92, %101 : vector<8x128xf32>
    %c1024 = arith.constant 1024 : index
    %c0_45 = arith.constant 0 : index
    %103 = vector.load %arg1[%c1024, %c0_45] : memref<1160x128xf32, #tpu.memory_space<vmem>>, vector<128x128xf32>
    %cst_46 = arith.constant dense<0.000000e+00> : vector<8x128xf32>
    %104 = tpu.matmul %102, %103, %cst_46 {dimension_numbers = #tpu.dot_dimension_numbers<[1], [0], [0], [1], [0, 0, 1, 1], [], []>} : vector<8x128xf32>, vector<128x128xf32>, vector<8x128xf32> -> vector<8x128xf32>
    %105 = arith.addf %71, %104 : vector<8x128xf32>
    %c1158 = arith.constant 1158 : index
    %c0_47 = arith.constant 0 : index
    %106 = vector.load %arg1[%c1158, %c0_47] : memref<1160x128xf32, #tpu.memory_space<vmem>>, vector<1x128xf32>
    %107 = vector.broadcast %106 : vector<1x128xf32> to vector<8x128xf32>
    %108 = arith.addf %105, %107 : vector<8x128xf32>
    %c0_48 = arith.constant 0 : index
    %c0_49 = arith.constant 0 : index
    %109 = vector.load %arg2[%c0_48, %c0_49] : memref<8x128xf32, #tpu.memory_space<vmem>>, vector<8x128xf32>
    tpu.vector_store %arg2[%c0_48, %c0_49], %108 {strides = array<i32>} : memref<8x128xf32, #tpu.memory_space<vmem>>, vector<8x128xf32>,
    return
  }
}

</mosaic_0001>

<bundles_post_ra>
// kernel: tpu_custom_call.1
= control target key start
LH: loop header
LB: loop body
LE: loop exit
PB: predicated region body
PF: predicated region fallthrough
CT: control target
= control target key end

     0   :  { %7 = vsyncpa [#allocation3], 0  ;;  %s1684_s0 = inlined_call_operand.hbm [shape: f32[8,384], index: 0, kind: input, shape index: {}]   ;;  %s1685_s1 = inlined_call_operand.hbm [shape: f32[1160,128], index: 1, kind: input, shape index: {}]   ;;  %s1686_s2 = inlined_call_operand.hbm [shape: f32[8,128], index: 2, kind: output, shape index: {}]  }
   0x1   :  { %8 = vsyncpa [#allocation6], 0 }
   0x2   :  { %9 = vsyncpa [#allocation4], 0  ;;  %s1468_s9 = smov [#allocation2]   ;;  %s1469_s11 = smov [#allocation5]  }
   0x3   :  { %s16_s10 = sshll.u32 %s1468_s9, 4  ;;  %s25_s12 = sshll.u32 %s1469_s11, 4  ;;  %s17_s10 = int_to_ptr.vmem [resolvable:$true] %s16_s10  ;;  %s26_s12 = int_to_ptr.vmem [resolvable:$true] %s25_s12 }
   0x4   :  { %s1410_s13 = scalar_lea.vmem %s17_s10, 384  ;;  %p1415_p1 = scmp.lt.s32.totalorder %s17_s10, %s17_s10 }
   0x5   :  { %p1411_p0 = scmp.ne.s32.totalorder %s17_s10, %s1410_s13  ;;  %p1416_p2 = scmp.lt.s32.totalorder %s1410_s13, %s1410_s13 }
   0x7   :  { %p1417_p3 = por %p1416_p2, %p1415_p1 }
   0x9   :  { %p1418_p4 = pnand %p1417_p3, %p1411_p0 }
   0xb   :  { %1421 = shalt.err (!%p1418_p4)
}
   0xc   :  { %19 = dma.hbm_to_vmem [thread:$0]  %s1684_s0, 384, %s17_s10, [#allocation3]  }
   0xd   :  { %s1430_s16 = scalar_lea.vmem %s26_s12, 18560  ;;  %p1435_p6 = scmp.lt.s32.totalorder %s26_s12, %s26_s12 }
   0xe   :  { %p1431_p5 = scmp.ne.s32.totalorder %s26_s12, %s1430_s16  ;;  %p1436_p7 = scmp.lt.s32.totalorder %s1430_s16, %s1430_s16 }
  0x10   :  { %p1437_p8 = por %p1436_p7, %p1435_p6 }
  0x12   :  { %p1438_p9 = pnand %p1437_p8, %p1431_p5 }
  0x14   :  { %1441 = shalt.err (!%p1438_p9)
}
  0x15   :  { %s1470_s17 = smov 128   ;;  %s1471_s18 = smov 8  }
  0x16   :  { %31 = dma.hbm_to_vmem [thread:$0]  %s1685_s1, 18560, %s26_s12, [#allocation6], %s1470_s17, %s1470_s17, %s1471_s18  }
  0x17   :  { %1462 = dma.done.wait [#allocation3], 384  }
  0x18   :  { %1463 = vsyncadd [#allocation3], 4294966912 }
  0x19   :  { %1464 = dma.done.wait [#allocation6], 18560  }
  0x1a   :  { %1465 = vsyncadd [#allocation6], 4294948736  ;;  %v1472_v0 = vmov 0.0   ;;  %vm1473_vm0 = vmmov 0   ;;  %v59_v1 = vld [vmem:[#allocation5 + $0x78] sm:$0xff]  ;;  %v58_v2 = vld [vmem:[#allocation5 + $0x70] sm:$0xff] }
  0x1b   :  { %1074 = vmatprep.subr.mxu0 %v1472_v0  ;;  %1106 = vmatprep.mubr.msk.f32.mxu0 %vm1473_vm0, %v1472_v0  ;;  %v57_v3 = vld [vmem:[#allocation5 + $0x68] sm:$0xff]  ;;  %v56_v4 = vld [vmem:[#allocation5 + $0x60] sm:$0xff]  ;;  %v55_v5 = vld [vmem:[#allocation5 + $0x58] sm:$0xff]  ;;  %s1474_s0 = smov [#allocation7]  }
  0x1c   :  { %1109 = vmatprep.subr.mxu1 %v1472_v0  ;;  %1141 = vmatprep.mubr.msk.f32.mxu1 %vm1473_vm0, %v1472_v0  ;;  %v54_v6 = vld [vmem:[#allocation5 + $0x50] sm:$0xff]  ;;  %v53_v7 = vld [vmem:[#allocation5 + $0x48] sm:$0xff]  ;;  %v76_v8 = vld [vmem:[#allocation5 + $0x1f8] sm:$0xff]  ;;  %s903_s1 = sshll.u32 %s1474_s0, 4  ;;  %s904_s1 = int_to_ptr.vmem [resolvable:$true] %s903_s1 }
  0x1d   :  { %1075 = vmatpush3.msra.mxu0 %v59_v1  ;;  %v75_v9 = vld [vmem:[#allocation5 + $0x1f0] sm:$0xff]  ;;  %v52_v10 = vld [vmem:[#allocation5 + $0x40] sm:$0xff]  ;;  %1110 = vmatpush3.msra.mxu1 %v76_v8  ;;  %v74_v11 = vld [vmem:[#allocation5 + $0x1e8] sm:$0xff]  ;;  %s1442_s21 = scalar_lea.vmem %s904_s1, 128  ;;  %p1447_p11 = scmp.lt.s32.totalorder %s904_s1, %s904_s1 }
  0x1e   :  { %1076 = vmatprep.subr.mxu0 %v1472_v0  ;;  %1111 = vmatprep.subr.mxu1 %v1472_v0  ;;  %v51_v12 = vld [vmem:[#allocation5 + $0x38] sm:$0xff]  ;;  %v73_v13 = vld [vmem:[#allocation5 + $0x1e0] sm:$0xff]  ;;  %v50_v14 = vld [vmem:[#allocation5 + $0x30] sm:$0xff]  ;;  %p1443_p10 = scmp.ne.s32.totalorder %s904_s1, %s1442_s21  ;;  %p1448_p12 = scmp.lt.s32.totalorder %s1442_s21, %s1442_s21 }
  0x1f   :  { %1077 = vmatpush3.msra.mxu0 %v58_v2  ;;  %1112 = vmatpush3.msra.mxu1 %v75_v9  ;;  %v72_v15 = vld [vmem:[#allocation5 + $0x1d8] sm:$0xff]  ;;  %v49_v16 = vld [vmem:[#allocation5 + $0x28] sm:$0xff]  ;;  %v71_v17 = vld [vmem:[#allocation5 + $0x1d0] sm:$0xff] }
  0x20   :  { %1078 = vmatprep.subr.mxu0 %v1472_v0  ;;  %1113 = vmatprep.subr.mxu1 %v1472_v0  ;;  %v48_v18 = vld [vmem:[#allocation5 + $0x20] sm:$0xff]  ;;  %v70_v19 = vld [vmem:[#allocation5 + $0x1c8] sm:$0xff]  ;;  %v47_v20 = vld [vmem:[#allocation5 + $0x18] sm:$0xff]  ;;  %p1449_p13 = por %p1448_p12, %p1447_p11 }
  0x21   :  { %1079 = vmatpush3.msra.mxu0 %v57_v3  ;;  %1114 = vmatpush3.msra.mxu1 %v74_v11  ;;  %v69_v21 = vld [vmem:[#allocation5 + $0x1c0] sm:$0xff]  ;;  %v46_v22 = vld [vmem:[#allocation5 + $0x10] sm:$0xff]  ;;  %v68_v23 = vld [vmem:[#allocation5 + $0x1b8] sm:$0xff] }
  0x22   :  { %1080 = vmatprep.subr.mxu0 %v1472_v0  ;;  %1115 = vmatprep.subr.mxu1 %v1472_v0  ;;  %v45_v24 = vld [vmem:[#allocation5 + $0x8] sm:$0xff]  ;;  %v67_v25 = vld [vmem:[#allocation5 + $0x1b0] sm:$0xff]  ;;  %v44_v26 = vld [vmem:[#allocation5] sm:$0xff]  ;;  %p1450_p0 = pnand %p1449_p13, %p1443_p10 }
  0x23   :  { %1081 = vmatpush3.msra.mxu0 %v56_v4  ;;  %1116 = vmatpush3.msra.mxu1 %v73_v13  ;;  %v43_v27 = vld [vmem:[#allocation2] sm:$0xff]  ;;  %v271_v28 = vld [vmem:[#allocation5 + $0xf8] sm:$0xff]  ;;  %v270_v30 = vld [vmem:[#allocation5 + $0xf0] sm:$0xff] }
  0x24   :  { %1082 = vmatprep.subr.mxu0 %v1472_v0  ;;  %1117 = vmatprep.subr.mxu1 %v1472_v0  ;;  %v66_v29 = vld [vmem:[#allocation5 + $0x1a8] sm:$0xff]  ;;  %v65_v31 = vld [vmem:[#allocation5 + $0x1a0] sm:$0xff]  ;;  %v64_v33 = vld [vmem:[#allocation5 + $0x198] sm:$0xff] }
  0x25   :  { %1083 = vmatpush3.msra.mxu0 %v55_v5  ;;  %1118 = vmatpush3.msra.mxu1 %v72_v15  ;;  %v269_v32 = vld [vmem:[#allocation5 + $0xe8] sm:$0xff]  ;;  %v268_v34 = vld [vmem:[#allocation5 + $0xe0] sm:$0xff]  ;;  %v267_v35 = vld [vmem:[#allocation5 + $0xd8] sm:$0xff] }
  0x26   :  { %1084 = vmatprep.subr.mxu0 %v1472_v0  ;;  %1119 = vmatprep.subr.mxu1 %v1472_v0  ;;  %v266_v36 = vld [vmem:[#allocation5 + $0xd0] sm:$0xff]  ;;  %v265_v37 = vld [vmem:[#allocation5 + $0xc8] sm:$0xff]  ;;  %v264_v38 = vld [vmem:[#allocation5 + $0xc0] sm:$0xff] }
  0x27   :  { %1085 = vmatpush3.msra.mxu0 %v54_v6  ;;  %1120 = vmatpush3.msra.mxu1 %v71_v17  ;;  %v263_v39 = vld [vmem:[#allocation5 + $0xb8] sm:$0xff]  ;;  %v262_v40 = vld [vmem:[#allocation5 + $0xb0] sm:$0xff]  ;;  %v261_v41 = vld [vmem:[#allocation5 + $0xa8] sm:$0xff] }
  0x28   :  { %1086 = vmatprep.subr.mxu0 %v1472_v0  ;;  %1121 = vmatprep.subr.mxu1 %v1472_v0  ;;  %v260_v42 = vld [vmem:[#allocation5 + $0xa0] sm:$0xff]  ;;  %v259_v43 = vld [vmem:[#allocation5 + $0x98] sm:$0xff]  ;;  %v258_v44 = vld [vmem:[#allocation5 + $0x90] sm:$0xff] }
  0x29   :  { %1087 = vmatpush3.msra.mxu0 %v53_v7  ;;  %1122 = vmatpush3.msra.mxu1 %v70_v19  ;;  %v257_v45 = vld [vmem:[#allocation5 + $0x88] sm:$0xff]  ;;  %v256_v46 = vld [vmem:[#allocation5 + $0x80] sm:$0xff]  ;;  %v255_v47 = vld [vmem:[#allocation2 + $0x8] sm:$0xff] }
  0x2a   :  { %1088 = vmatprep.subr.mxu0 %v1472_v0  ;;  %1123 = vmatprep.subr.mxu1 %v1472_v0  ;;  %v63_v48 = vld [vmem:[#allocation5 + $0x190] sm:$0xff]  ;;  %v62_v49 = vld [vmem:[#allocation5 + $0x188] sm:$0xff]  ;;  %v61_v50 = vld [vmem:[#allocation5 + $0x180] sm:$0xff] }
  0x2b   :  { %1089 = vmatpush3.msra.mxu0 %v52_v10  ;;  %1124 = vmatpush3.msra.mxu1 %v69_v21  ;;  %v914_v51 = vld [vmem:[#allocation5 + $0x480] ss:$0 sm:$0xff]  ;;  %v288_v56 = vld [vmem:[#allocation5 + $0x278] sm:$0xff]  ;;  %v287_v57 = vld [vmem:[#allocation5 + $0x270] sm:$0xff] }
  0x2c   :  { %1090 = vmatprep.subr.mxu0 %v1472_v0  ;;  %1125 = vmatprep.subr.mxu1 %v1472_v0  ;;  %v286_v58 = vld [vmem:[#allocation5 + $0x268] sm:$0xff]  ;;  %v285_v59 = vld [vmem:[#allocation5 + $0x260] sm:$0xff]  ;;  %v284_v60 = vld [vmem:[#allocation5 + $0x258] sm:$0xff] }
  0x2d   :  { %1091 = vmatpush3.msra.mxu0 %v51_v12  ;;  %1126 = vmatpush3.msra.mxu1 %v68_v23  ;;  %v283_v61 = vld [vmem:[#allocation5 + $0x250] sm:$0xff]  ;;  %v282_v62 = vld [vmem:[#allocation5 + $0x248] sm:$0xff]  ;;  %v281_v63 = vld [vmem:[#allocation5 + $0x240] sm:$0xff] }
  0x2e   :  { %1092 = vmatprep.subr.mxu0 %v1472_v0  ;;  %1127 = vmatprep.subr.mxu1 %v1472_v0  ;;  %v280_v1 = vld [vmem:[#allocation5 + $0x238] sm:$0xff]  ;;  %v279_v2 = vld [vmem:[#allocation5 + $0x230] sm:$0xff]  ;;  %v278_v3 = vld [vmem:[#allocation5 + $0x228] sm:$0xff] }
  0x2f   :  { %1093 = vmatpush3.msra.mxu0 %v50_v14  ;;  %1128 = vmatpush3.msra.mxu1 %v67_v25  ;;  %v277_v4 = vld [vmem:[#allocation5 + $0x220] sm:$0xff]  ;;  %v276_v5 = vld [vmem:[#allocation5 + $0x218] sm:$0xff]  ;;  %v275_v6 = vld [vmem:[#allocation5 + $0x210] sm:$0xff] }
  0x30   :  { %1094 = vmatprep.subr.mxu0 %v1472_v0  ;;  %1129 = vmatprep.subr.mxu1 %v1472_v0  ;;  %v916_v7 = vld [vmem:[#allocation5 + $0x481] ss:$0 sm:$0xff]  ;;  %v274_v8 = vld [vmem:[#allocation5 + $0x208] sm:$0xff]  ;;  %v915_v14 = vld [vmem:[#allocation5 + $0x483] ss:$0 sm:$0xff] }
  0x31   :  { %1095 = vmatpush3.msra.mxu0 %v49_v16  ;;  %1130 = vmatpush3.msra.mxu1 %v66_v29  ;;  %v273_v11 = vld [vmem:[#allocation5 + $0x200] sm:$0xff]  ;;  %v253_v23 = vld [vmem:[#allocation5 + $0x370] sm:$0xff] }
  0x32   :  { %1096 = vmatprep.subr.mxu0 %v1472_v0  ;;  %1131 = vmatprep.subr.mxu1 %v1472_v0  ;;  %v251_v25 = vld [vmem:[#allocation5 + $0x360] sm:$0xff] }
  0x33   :  { %1097 = vmatpush3.msra.mxu0 %v48_v18  ;;  %1132 = vmatpush3.msra.mxu1 %v65_v31  ;;  %v917_v18 = vld [vmem:[#allocation5 + $0x484] ss:$0 sm:$0xff] }
  0x34   :  { %1098 = vmatprep.subr.mxu0 %v1472_v0  ;;  %1133 = vmatprep.subr.mxu1 %v1472_v0 }
  0x35   :  { %1099 = vmatpush3.msra.mxu0 %v47_v20  ;;  %1134 = vmatpush3.msra.mxu1 %v64_v33 }
  0x36   :  { %1100 = vmatprep.subr.mxu0 %v1472_v0  ;;  %1135 = vmatprep.subr.mxu1 %v1472_v0 }
  0x37   :  { %1101 = vmatpush3.msra.mxu0 %v46_v22  ;;  %1136 = vmatpush3.msra.mxu1 %v63_v48  ;;  %v254_v22 = vld [vmem:[#allocation5 + $0x378] sm:$0xff] }
  0x38   :  { %1102 = vmatprep.subr.mxu0 %v1472_v0  ;;  %1137 = vmatprep.subr.mxu1 %v1472_v0 }
  0x39   :  { %1103 = vmatpush3.msra.mxu0 %v45_v24  ;;  %1138 = vmatpush3.msra.mxu1 %v62_v49  ;;  %v252_v24 = vld [vmem:[#allocation5 + $0x368] sm:$0xff]  ;;  %v239_v49 = vld [vmem:[#allocation5 + $0x300] sm:$0xff] }
  0x3a   :  { %1104 = vmatprep.subr.mxu0 %v1472_v0  ;;  %1139 = vmatprep.subr.mxu1 %v1472_v0 }
  0x3b   :  { %1105 = vmatpush3.msra.mxu0 %v44_v26  ;;  %1140 = vmatpush3.msra.mxu1 %v61_v50  ;;  %v250_v26 = vld [vmem:[#allocation5 + $0x358] sm:$0xff] }
  0x3c   :  { %1107 = vmatmul.mubr.f32.vlgmr.msra.gmra.mxu0 %v43_v27  ;;  %1144 = vmatprep.subr.mxu0 %v1472_v0  ;;  %v38_v27 = vlaneseq }
  0x3d   :  { %1145 = vmatpush3.msra.mxu0 %v271_v28  ;;  %1176 = vmatprep.mubr.msk.f32.mxu0 %vm1473_vm0, %v1472_v0 }
  0x3e   :  { %1146 = vmatprep.subr.mxu0 %v1472_v0  ;;  %1179 = vmatprep.subr.mxu1 %v1472_v0  ;;  %v39_v28 = vand.u32 127, %v38_v27  ;;  %v610_v27 = vld [vmem:[#allocation5 + $0x110] sm:$0xff] }
  0x3f   :  { %1147 = vmatpush3.msra.mxu0 %v270_v30 }
  0x40   :  { %1148 = vmatprep.subr.mxu0 %v1472_v0  ;;  %vm40_vm1 = vcmp.lt.s32.totalorder %v39_v28, 32  ;;  %v609_v28 = vld [vmem:[#allocation5 + $0x108] sm:$0xff] }
  0x41   :  { %1149 = vmatpush3.msra.mxu0 %v269_v32  ;;  %v1583_v31 = vsel %vm40_vm1, 1.0, %v1472_v0 }
  0x42   :  { %1150 = vmatprep.subr.mxu0 %v1472_v0 }
  0x43   :  { %1151 = vmatpush3.msra.mxu0 %v268_v34 }
  0x44   :  { %1152 = vmatprep.subr.mxu0 %v1472_v0 }
  0x45   :  { %1153 = vmatpush3.msra.mxu0 %v267_v35  ;;  %v249_v35 = vld [vmem:[#allocation5 + $0x350] sm:$0xff] }
  0x46   :  { %1154 = vmatprep.subr.mxu0 %v1472_v0 }
  0x47   :  { %1155 = vmatpush3.msra.mxu0 %v266_v36  ;;  %v248_v36 = vld [vmem:[#allocation5 + $0x348] sm:$0xff] }
  0x48   :  { %1156 = vmatprep.subr.mxu0 %v1472_v0 }
  0x49   :  { %1157 = vmatpush3.msra.mxu0 %v265_v37  ;;  %v247_v37 = vld [vmem:[#allocation5 + $0x340] sm:$0xff] }
  0x4a   :  { %1158 = vmatprep.subr.mxu0 %v1472_v0 }
  0x4b   :  { %1159 = vmatpush3.msra.mxu0 %v264_v38  ;;  %v246_v38 = vld [vmem:[#allocation5 + $0x338] sm:$0xff] }
  0x4c   :  { %1160 = vmatprep.subr.mxu0 %v1472_v0 }
  0x4d   :  { %1161 = vmatpush3.msra.mxu0 %v263_v39  ;;  %v245_v39 = vld [vmem:[#allocation5 + $0x330] sm:$0xff] }
  0x4e   :  { %1162 = vmatprep.subr.mxu0 %v1472_v0 }
  0x4f   :  { %1163 = vmatpush3.msra.mxu0 %v262_v40  ;;  %v244_v40 = vld [vmem:[#allocation5 + $0x328] sm:$0xff] }
  0x50   :  { %1164 = vmatprep.subr.mxu0 %v1472_v0 }
  0x51   :  { %1165 = vmatpush3.msra.mxu0 %v261_v41  ;;  %v466_v41 = vld [vmem:[#allocation5 + $0x3f8] sm:$0xff] }
  0x52   :  { %1166 = vmatprep.subr.mxu0 %v1472_v0 }
  0x53   :  { %1167 = vmatpush3.msra.mxu0 %v260_v42  ;;  %v243_v42 = vld [vmem:[#allocation5 + $0x320] sm:$0xff] }
  0x54   :  { %1168 = vmatprep.subr.mxu0 %v1472_v0 }
  0x55   :  { %1169 = vmatpush3.msra.mxu0 %v259_v43  ;;  %v242_v43 = vld [vmem:[#allocation5 + $0x318] sm:$0xff] }
  0x56   :  { %1170 = vmatprep.subr.mxu0 %v1472_v0 }
  0x57   :  { %1171 = vmatpush3.msra.mxu0 %v258_v44  ;;  %v241_v44 = vld [vmem:[#allocation5 + $0x310] sm:$0xff] }
  0x58   :  { %1172 = vmatprep.subr.mxu0 %v1472_v0 }
  0x59   :  { %1173 = vmatpush3.msra.mxu0 %v257_v45 }
  0x5a   :  { %1174 = vmatprep.subr.mxu0 %v1472_v0 }
  0x5b   :  { %1175 = vmatpush3.msra.mxu0 %v256_v46 }
  0x5c   :  { %1177 = vmatmul.mubr.f32.vlgmr.msra.gmra.mxu0 %v255_v47  ;;  %1214 = vmatprep.subr.mxu0 %v1472_v0  ;;  %v240_v47 = vld [vmem:[#allocation5 + $0x308] sm:$0xff] }
  0x5d   :  { %1246 = vmatprep.mubr.msk.f32.mxu0 %vm1473_vm0, %v1472_v0  ;;  %1215 = vmatpush3.msra.mxu0 %v466_v41  ;;  %v631_v41 = vld [vmem:[#allocation5 + $0x2b0] sm:$0xff] }
  0x5e   :  { %1216 = vmatprep.subr.mxu0 %v1472_v0 }
  0xfc   :  { %v148_v52 = vpop.f32.mrf.mxu0 }
  0xfd   :  { %v149_v53 = vadd.f32 %v914_v51, %v148_v52  ;;  %v465_v52 = vld [vmem:[#allocation5 + $0x3f0] sm:$0xff] }
  0xfe   :  { %v1108_v54 = vpop.f32.mrf.mxu0  ;;  %1217 = vmatpush3.msra.mxu0 %v465_v52 }
  0xff   :  { %v152_v55 = vmax.f32 %v149_v53, 0.0  ;;  %v464_v53 = vld [vmem:[#allocation5 + $0x3e8] sm:$0xff]  ;;  %1218 = vmatprep.subr.mxu0 %v1472_v0  ;;  %v463_v54 = vld [vmem:[#allocation5 + $0x3e0] sm:$0xff] }
 0x100   :  { %1219 = vmatpush3.msra.mxu0 %v464_v53  ;;  %v918_v53 = vld [vmem:[#allocation5 + $0x482] ss:$0 sm:$0xff] }
 0x101   :  { %1142 = vmatmul.mubr.f32.vlgmr.msra.gmra.mxu1 %v152_v55  ;;  %1220 = vmatprep.subr.mxu0 %v1472_v0  ;;  %v462_v55 = vld [vmem:[#allocation5 + $0x3d8] sm:$0xff] }
 0x102   :  { %1180 = vmatpush3.msra.mxu1 %v288_v56  ;;  %1211 = vmatprep.mubr.msk.f32.mxu1 %vm1473_vm0, %v1472_v0  ;;  %v461_v56 = vld [vmem:[#allocation5 + $0x3d0] sm:$0xff] }
 0x103   :  { %1181 = vmatprep.subr.mxu1 %v1472_v0  ;;  %1221 = vmatpush3.msra.mxu0 %v463_v54 }
 0x104   :  { %1182 = vmatpush3.msra.mxu1 %v287_v57  ;;  %1222 = vmatprep.subr.mxu0 %v1472_v0  ;;  %v460_v57 = vld [vmem:[#allocation5 + $0x3c8] sm:$0xff] }
 0x105   :  { %1183 = vmatprep.subr.mxu1 %v1472_v0  ;;  %1223 = vmatpush3.msra.mxu0 %v462_v55 }
 0x106   :  { %1184 = vmatpush3.msra.mxu1 %v286_v58  ;;  %1224 = vmatprep.subr.mxu0 %v1472_v0  ;;  %v459_v58 = vld [vmem:[#allocation5 + $0x3c0] sm:$0xff] }
 0x107   :  { %1185 = vmatprep.subr.mxu1 %v1472_v0  ;;  %1225 = vmatpush3.msra.mxu0 %v461_v56 }
 0x108   :  { %1186 = vmatpush3.msra.mxu1 %v285_v59  ;;  %1226 = vmatprep.subr.mxu0 %v1472_v0  ;;  %v458_v59 = vld [vmem:[#allocation5 + $0x3b8] sm:$0xff] }
 0x109   :  { %1187 = vmatprep.subr.mxu1 %v1472_v0  ;;  %1227 = vmatpush3.msra.mxu0 %v460_v57 }
 0x10a   :  { %1188 = vmatpush3.msra.mxu1 %v284_v60  ;;  %1228 = vmatprep.subr.mxu0 %v1472_v0  ;;  %v457_v60 = vld [vmem:[#allocation5 + $0x3b0] sm:$0xff] }
 0x10b   :  { %1189 = vmatprep.subr.mxu1 %v1472_v0  ;;  %1229 = vmatpush3.msra.mxu0 %v459_v58  ;;  %v919_v58 = vld [vmem:[#allocation5 + $0x485] ss:$0 sm:$0xff] }
 0x10c   :  { %1190 = vmatpush3.msra.mxu1 %v283_v61  ;;  %1230 = vmatprep.subr.mxu0 %v1472_v0  ;;  %v456_v61 = vld [vmem:[#allocation5 + $0x3a8] sm:$0xff] }
 0x10d   :  { %1191 = vmatprep.subr.mxu1 %v1472_v0  ;;  %1231 = vmatpush3.msra.mxu0 %v458_v59 }
 0x10e   :  { %1192 = vmatpush3.msra.mxu1 %v282_v62  ;;  %1232 = vmatprep.subr.mxu0 %v1472_v0  ;;  %v455_v62 = vld [vmem:[#allocation5 + $0x3a0] sm:$0xff] }
 0x10f   :  { %1193 = vmatprep.subr.mxu1 %v1472_v0  ;;  %1233 = vmatpush3.msra.mxu0 %v457_v60 }
 0x110   :  { %1194 = vmatpush3.msra.mxu1 %v281_v63  ;;  %1234 = vmatprep.subr.mxu0 %v1472_v0  ;;  %v454_v63 = vld [vmem:[#allocation5 + $0x398] sm:$0xff] }
 0x111   :  { %1195 = vmatprep.subr.mxu1 %v1472_v0  ;;  %1235 = vmatpush3.msra.mxu0 %v456_v61 }
 0x112   :  { %1196 = vmatpush3.msra.mxu1 %v280_v1  ;;  %1236 = vmatprep.subr.mxu0 %v1472_v0  ;;  %v453_v1 = vld [vmem:[#allocation5 + $0x390] sm:$0xff] }
 0x113   :  { %1197 = vmatprep.subr.mxu1 %v1472_v0  ;;  %1237 = vmatpush3.msra.mxu0 %v455_v62  ;;  %v818_v62 = vld [vmem:[#allocation5 + $0x478] sm:$0xff] }
 0x114   :  { %1198 = vmatpush3.msra.mxu1 %v279_v2  ;;  %1238 = vmatprep.subr.mxu0 %v1472_v0  ;;  %v452_v2 = vld [vmem:[#allocation5 + $0x388] sm:$0xff] }
 0x115   :  { %1199 = vmatprep.subr.mxu1 %v1472_v0  ;;  %1239 = vmatpush3.msra.mxu0 %v454_v63  ;;  %v817_v63 = vld [vmem:[#allocation5 + $0x470] sm:$0xff] }
 0x116   :  { %1200 = vmatpush3.msra.mxu1 %v278_v3  ;;  %1240 = vmatprep.subr.mxu0 %v1472_v0  ;;  %v451_v3 = vld [vmem:[#allocation5 + $0x380] sm:$0xff] }
 0x117   :  { %1201 = vmatprep.subr.mxu1 %v1472_v0  ;;  %1241 = vmatpush3.msra.mxu0 %v453_v1  ;;  %v816_v1 = vld [vmem:[#allocation5 + $0x468] sm:$0xff] }
 0x118   :  { %1202 = vmatpush3.msra.mxu1 %v277_v4  ;;  %1242 = vmatprep.subr.mxu0 %v1472_v0 }
 0x119   :  { %1203 = vmatprep.subr.mxu1 %v1472_v0  ;;  %1243 = vmatpush3.msra.mxu0 %v452_v2  ;;  %v815_v2 = vld [vmem:[#allocation5 + $0x460] sm:$0xff] }
 0x11a   :  { %1204 = vmatpush3.msra.mxu1 %v276_v5  ;;  %1244 = vmatprep.subr.mxu0 %v1472_v0 }
 0x11b   :  { %1205 = vmatprep.subr.mxu1 %v1472_v0  ;;  %1245 = vmatpush3.msra.mxu0 %v451_v3  ;;  %v814_v3 = vld [vmem:[#allocation5 + $0x458] sm:$0xff] }
 0x11c   :  { %v360_v9 = vpop.f32.mrf.mxu0  ;;  %1206 = vmatpush3.msra.mxu1 %v275_v6  ;;  %1284 = vmatprep.subr.mxu0 %v1472_v0 }
 0x11d   :  { %v361_v10 = vadd.f32 %v916_v7, %v360_v9  ;;  %1207 = vmatprep.subr.mxu1 %v1472_v0 }
 0x11e   :  { %v1178_v12 = vpop.f32.mrf.mxu0  ;;  %1208 = vmatpush3.msra.mxu1 %v274_v8 }
 0x11f   :  { %v364_v13 = vmax.f32 %v361_v10, 0.0  ;;  %1209 = vmatprep.subr.mxu1 %v1472_v0 }
 0x120   :  { %1210 = vmatpush3.msra.mxu1 %v273_v11 }
 0x121   :  { %1212 = vmatmul.mubr.f32.vlgmr.msra.gmra.mxu1 %v364_v13  ;;  %1249 = vmatprep.subr.mxu1 %v1472_v0 }
 0x122   :  { %1281 = vmatprep.mubr.msk.f32.mxu1 %vm1473_vm0, %v1472_v0  ;;  %1250 = vmatpush3.msra.mxu1 %v254_v22  ;;  %v615_v22 = vld [vmem:[#allocation5 + $0x138] sm:$0xff] }
 0x123   :  { %1251 = vmatprep.subr.mxu1 %v1472_v0 }
 0x124   :  { %1252 = vmatpush3.msra.mxu1 %v253_v23  ;;  %v614_v23 = vld [vmem:[#allocation5 + $0x130] sm:$0xff] }
 0x125   :  { %1253 = vmatprep.subr.mxu1 %v1472_v0 }
 0x126   :  { %1254 = vmatpush3.msra.mxu1 %v252_v24  ;;  %v613_v24 = vld [vmem:[#allocation5 + $0x128] sm:$0xff] }
 0x127   :  { %1255 = vmatprep.subr.mxu1 %v1472_v0 }
 0x128   :  { %1256 = vmatpush3.msra.mxu1 %v251_v25  ;;  %v612_v25 = vld [vmem:[#allocation5 + $0x120] sm:$0xff] }
 0x129   :  { %1257 = vmatprep.subr.mxu1 %v1472_v0 }
 0x12a   :  { %1258 = vmatpush3.msra.mxu1 %v250_v26  ;;  %v611_v26 = vld [vmem:[#allocation5 + $0x118] sm:$0xff] }
 0x12b   :  { %1259 = vmatprep.subr.mxu1 %v1472_v0 }
 0x12c   :  { %1260 = vmatpush3.msra.mxu1 %v249_v35  ;;  %v637_v35 = vld [vmem:[#allocation5 + $0x2e0] sm:$0xff] }
 0x12d   :  { %1261 = vmatprep.subr.mxu1 %v1472_v0 }
 0x12e   :  { %1262 = vmatpush3.msra.mxu1 %v248_v36  ;;  %v636_v36 = vld [vmem:[#allocation5 + $0x2d8] sm:$0xff] }
 0x12f   :  { %1263 = vmatprep.subr.mxu1 %v1472_v0 }
 0x130   :  { %1264 = vmatpush3.msra.mxu1 %v247_v37  ;;  %v635_v37 = vld [vmem:[#allocation5 + $0x2d0] sm:$0xff] }
 0x131   :  { %1265 = vmatprep.subr.mxu1 %v1472_v0 }
 0x132   :  { %1266 = vmatpush3.msra.mxu1 %v246_v38  ;;  %v634_v38 = vld [vmem:[#allocation5 + $0x2c8] sm:$0xff] }
 0x133   :  { %1267 = vmatprep.subr.mxu1 %v1472_v0 }
 0x134   :  { %1268 = vmatpush3.msra.mxu1 %v245_v39  ;;  %v633_v39 = vld [vmem:[#allocation5 + $0x2c0] sm:$0xff] }
 0x135   :  { %1269 = vmatprep.subr.mxu1 %v1472_v0 }
 0x136   :  { %1270 = vmatpush3.msra.mxu1 %v244_v40  ;;  %v632_v40 = vld [vmem:[#allocation5 + $0x2b8] sm:$0xff] }
 0x137   :  { %1271 = vmatprep.subr.mxu1 %v1472_v0 }
 0x138   :  { %1272 = vmatpush3.msra.mxu1 %v243_v42  ;;  %v630_v42 = vld [vmem:[#allocation5 + $0x2a8] sm:$0xff] }
 0x139   :  { %1273 = vmatprep.subr.mxu1 %v1472_v0 }
 0x13a   :  { %1274 = vmatpush3.msra.mxu1 %v242_v43  ;;  %v629_v43 = vld [vmem:[#allocation5 + $0x2a0] sm:$0xff] }
 0x13b   :  { %1275 = vmatprep.subr.mxu1 %v1472_v0 }
 0x13c   :  { %1276 = vmatpush3.msra.mxu1 %v241_v44  ;;  %v628_v44 = vld [vmem:[#allocation5 + $0x298] sm:$0xff] }
 0x13d   :  { %1277 = vmatprep.subr.mxu1 %v1472_v0 }
 0x13e   :  { %1278 = vmatpush3.msra.mxu1 %v240_v47  ;;  %v625_v47 = vld [vmem:[#allocation5 + $0x280] sm:$0xff] }
 0x13f   :  { %1279 = vmatprep.subr.mxu1 %v1472_v0 }
 0x140   :  { %1280 = vmatpush3.msra.mxu1 %v239_v49 }
 0x141   :  { %1319 = vmatprep.subr.mxu1 %v1472_v0 }
 0x1c1   :  { %v223_v15 = vpop.f32.mrf.mxu1 }
 0x1c2   :  { %v224_v16 = vadd.f32 %v915_v14, %v223_v15  ;;  %v623_v14 = vld [vmem:[#allocation5 + $0x178] sm:$0xff]  ;;  %v622_v15 = vld [vmem:[#allocation5 + $0x170] sm:$0xff] }
 0x1c3   :  { %v1143_v17 = vpop.f32.mrf.mxu1 }
 0x1c4   :  { %227 = vadd.xlane.f32.xlu1 %v224_v16  ;;  %v620_v17 = vld [vmem:[#allocation5 + $0x160] sm:$0xff] }
 0x1e1   :  { %v435_v19 = vpop.f32.mrf.mxu1 }
 0x1e2   :  { %v1574_v20 = vadd.f32 %v917_v18, %v435_v19  ;;  %v619_v18 = vld [vmem:[#allocation5 + $0x158] sm:$0xff]  ;;  %v618_v19 = vld [vmem:[#allocation5 + $0x150] sm:$0xff] }
 0x1e3   :  { %v1213_v21 = vpop.f32.mrf.mxu1 }
 0x1e4   :  { %439 = vadd.xlane.f32.xlu0 %v1574_v20  ;;  %v616_v21 = vld [vmem:[#allocation5 + $0x140] sm:$0xff] }
 0x24d   :  { %v228_v29 = vpop.xlane.xlu1 %227 }
 0x24e   :  { %v229_v30 = vmul.f32 0.03125, %v228_v29  ;;  %v608_v29 = vld [vmem:[#allocation5 + $0x100] sm:$0xff] }
 0x250   :  { %v230_v32 = vsub.f32 %v224_v16, %v229_v30  ;;  %v621_v16 = vld [vmem:[#allocation5 + $0x168] sm:$0xff]  ;;  %v607_v30 = vld [vmem:[#allocation2 + $0x10] sm:$0xff] }
 0x252   :  { %v1586_v33 = vmul.f32 %v1583_v31, %v230_v32  ;;  %v640_v32 = vld [vmem:[#allocation5 + $0x2f8] sm:$0xff] }
 0x254   :  { %v232_v34 = vmul.f32 %v1586_v33, %v1586_v33 }
 0x256   :  { %233 = vadd.xlane.f32.xlu1 %v232_v34  ;;  %v638_v34 = vld [vmem:[#allocation5 + $0x2e8] sm:$0xff] }
 0x26d   :  { %v440_v45 = vpop.xlane.xlu0 %439 }
 0x26e   :  { %v441_v46 = vmul.f32 0.03125, %v440_v45  ;;  %v627_v45 = vld [vmem:[#allocation5 + $0x290] sm:$0xff] }
 0x270   :  { %v442_v48 = vsub.f32 %v1574_v20, %v441_v46  ;;  %v617_v20 = vld [vmem:[#allocation5 + $0x148] sm:$0xff] }
 0x271   :  { %v626_v46 = vld [vmem:[#allocation5 + $0x288] sm:$0xff] }
 0x272   :  { %v1602_v50 = vmul.f32 %v1583_v31, %v442_v48 }
 0x274   :  { %v444_v51 = vmul.f32 %v1602_v50, %v1602_v50 }
 0x276   :  { %445 = vadd.xlane.f32.xlu0 %v444_v51 }
 0x2df   :  { %v234_v4 = vpop.xlane.xlu1 %233 }
 0x2e0   :  { %v235_v5 = vmul.f32 0.03125, %v234_v4  ;;  %v813_v4 = vld [vmem:[#allocation5 + $0x450] sm:$0xff] }
 0x2e2   :  { %v236_v6 = vadd.f32 1e-05, %v235_v5 }
 0x2e4   :  { %1396 = vrsqrt.f32 %v236_v6 }
 0x2f1   :  { %v1397_v7 = vpop.eup %1396 }
 0x2f2   :  { %v238_v8 = vmul.f32 %v1397_v7, %v1586_v33  ;;  %v639_v33 = vld [vmem:[#allocation5 + $0x2f0] sm:$0xff] }
 0x2f4   :  { %1282 = vmatmul.mubr.f32.vlgmr.msra.gmra.mxu1 %v238_v8 }
 0x2f5   :  { %1351 = vmatprep.mubr.msk.f32.mxu1 %vm1473_vm0, %v1472_v0  ;;  %1320 = vmatpush3.msra.mxu1 %v640_v32 }
 0x2f6   :  { %1321 = vmatprep.subr.mxu1 %v1472_v0 }
 0x2f7   :  { %1322 = vmatpush3.msra.mxu1 %v639_v33 }
 0x2f8   :  { %1323 = vmatprep.subr.mxu1 %v1472_v0 }
 0x2f9   :  { %1324 = vmatpush3.msra.mxu1 %v638_v34 }
 0x2fa   :  { %1325 = vmatprep.subr.mxu1 %v1472_v0 }
 0x2fb   :  { %1326 = vmatpush3.msra.mxu1 %v637_v35 }
 0x2fc   :  { %1327 = vmatprep.subr.mxu1 %v1472_v0 }
 0x2fd   :  { %1328 = vmatpush3.msra.mxu1 %v636_v36 }
 0x2fe   :  { %1329 = vmatprep.subr.mxu1 %v1472_v0 }
 0x2ff   :  { %v446_v9 = vpop.xlane.xlu0 %445  ;;  %1330 = vmatpush3.msra.mxu1 %v635_v37 }
 0x300   :  { %v447_v10 = vmul.f32 0.03125, %v446_v9  ;;  %1331 = vmatprep.subr.mxu1 %v1472_v0 }
 0x301   :  { %1332 = vmatpush3.msra.mxu1 %v634_v38 }
 0x302   :  { %v448_v11 = vadd.f32 1e-05, %v447_v10  ;;  %1333 = vmatprep.subr.mxu1 %v1472_v0  ;;  %v812_v10 = vld [vmem:[#allocation5 + $0x448] sm:$0xff] }
 0x303   :  { %1334 = vmatpush3.msra.mxu1 %v633_v39 }
 0x304   :  { %1398 = vrsqrt.f32 %v448_v11  ;;  %1335 = vmatprep.subr.mxu1 %v1472_v0  ;;  %v811_v11 = vld [vmem:[#allocation5 + $0x440] sm:$0xff] }
 0x305   :  { %1336 = vmatpush3.msra.mxu1 %v632_v40 }
 0x306   :  { %1337 = vmatprep.subr.mxu1 %v1472_v0 }
 0x307   :  { %1338 = vmatpush3.msra.mxu1 %v631_v41 }
 0x308   :  { %1339 = vmatprep.subr.mxu1 %v1472_v0 }
 0x309   :  { %1340 = vmatpush3.msra.mxu1 %v630_v42 }
 0x30a   :  { %1341 = vmatprep.subr.mxu1 %v1472_v0 }
 0x30b   :  { %1342 = vmatpush3.msra.mxu1 %v629_v43 }
 0x30c   :  { %1343 = vmatprep.subr.mxu1 %v1472_v0 }
 0x30d   :  { %1344 = vmatpush3.msra.mxu1 %v628_v44 }
 0x30e   :  { %1345 = vmatprep.subr.mxu1 %v1472_v0 }
 0x30f   :  { %1346 = vmatpush3.msra.mxu1 %v627_v45 }
 0x310   :  { %1347 = vmatprep.subr.mxu1 %v1472_v0 }
 0x311   :  { %v1399_v12 = vpop.eup %1398  ;;  %1348 = vmatpush3.msra.mxu1 %v626_v46 }
 0x312   :  { %v450_v13 = vmul.f32 %v1399_v12, %v1602_v50  ;;  %1349 = vmatprep.subr.mxu1 %v1472_v0  ;;  %v810_v12 = vld [vmem:[#allocation5 + $0x438] sm:$0xff] }
 0x313   :  { %1350 = vmatpush3.msra.mxu1 %v625_v47 }
 0x314   :  { %1247 = vmatmul.mubr.f32.vlgmr.msra.gmra.mxu0 %v450_v13  ;;  %v809_v13 = vld [vmem:[#allocation5 + $0x430] sm:$0xff] }
 0x315   :  { %1285 = vmatpush3.msra.mxu0 %v623_v14  ;;  %1316 = vmatprep.mubr.msk.f32.mxu0 %vm1473_vm0, %v1472_v0  ;;  %v808_v14 = vld [vmem:[#allocation5 + $0x428] sm:$0xff] }
 0x316   :  { %1286 = vmatprep.subr.mxu0 %v1472_v0 }
 0x317   :  { %1287 = vmatpush3.msra.mxu0 %v622_v15  ;;  %v806_v15 = vld [vmem:[#allocation5 + $0x418] sm:$0xff] }
 0x318   :  { %1288 = vmatprep.subr.mxu0 %v1472_v0 }
 0x319   :  { %1289 = vmatpush3.msra.mxu0 %v621_v16  ;;  %v805_v16 = vld [vmem:[#allocation5 + $0x410] sm:$0xff] }
 0x31a   :  { %1290 = vmatprep.subr.mxu0 %v1472_v0 }
 0x31b   :  { %1291 = vmatpush3.msra.mxu0 %v620_v17  ;;  %v804_v17 = vld [vmem:[#allocation5 + $0x408] sm:$0xff] }
 0x31c   :  { %1292 = vmatprep.subr.mxu0 %v1472_v0 }
 0x31d   :  { %1293 = vmatpush3.msra.mxu0 %v619_v18  ;;  %v803_v18 = vld [vmem:[#allocation5 + $0x400] sm:$0xff] }
 0x31e   :  { %1294 = vmatprep.subr.mxu0 %v1472_v0 }
 0x31f   :  { %1295 = vmatpush3.msra.mxu0 %v618_v19 }
 0x320   :  { %1296 = vmatprep.subr.mxu0 %v1472_v0 }
 0x321   :  { %1297 = vmatpush3.msra.mxu0 %v617_v20 }
 0x322   :  { %1298 = vmatprep.subr.mxu0 %v1472_v0 }
 0x323   :  { %1299 = vmatpush3.msra.mxu0 %v616_v21 }
 0x324   :  { %1300 = vmatprep.subr.mxu0 %v1472_v0 }
 0x325   :  { %1301 = vmatpush3.msra.mxu0 %v615_v22 }
 0x326   :  { %1302 = vmatprep.subr.mxu0 %v1472_v0 }
 0x327   :  { %1303 = vmatpush3.msra.mxu0 %v614_v23 }
 0x328   :  { %1304 = vmatprep.subr.mxu0 %v1472_v0 }
 0x329   :  { %1305 = vmatpush3.msra.mxu0 %v613_v24 }
 0x32a   :  { %1306 = vmatprep.subr.mxu0 %v1472_v0 }
 0x32b   :  { %1307 = vmatpush3.msra.mxu0 %v612_v25  ;;  %v920_v25 = vld [vmem:[#allocation5 + $0x486] ss:$0 sm:$0xff] }
 0x32c   :  { %1308 = vmatprep.subr.mxu0 %v1472_v0 }
 0x32d   :  { %1309 = vmatpush3.msra.mxu0 %v611_v26 }
 0x32e   :  { %1310 = vmatprep.subr.mxu0 %v1472_v0 }
 0x32f   :  { %1311 = vmatpush3.msra.mxu0 %v610_v27 }
 0x330   :  { %1312 = vmatprep.subr.mxu0 %v1472_v0 }
 0x331   :  { %1313 = vmatpush3.msra.mxu0 %v609_v28 }
 0x332   :  { %1314 = vmatprep.subr.mxu0 %v1472_v0 }
 0x333   :  { %1315 = vmatpush3.msra.mxu0 %v608_v29 }
 0x334   :  { %1317 = vmatmul.mubr.f32.vlgmr.msra.gmra.mxu0 %v607_v30  ;;  %1354 = vmatprep.subr.mxu0 %v1472_v0 }
 0x335   :  { %1386 = vmatprep.mubr.msk.f32.mxu0 %vm1473_vm0, %v1472_v0  ;;  %1355 = vmatpush3.msra.mxu0 %v818_v62 }
 0x336   :  { %1356 = vmatprep.subr.mxu0 %v1472_v0 }
 0x337   :  { %1357 = vmatpush3.msra.mxu0 %v817_v63 }
 0x338   :  { %1358 = vmatprep.subr.mxu0 %v1472_v0 }
 0x339   :  { %1359 = vmatpush3.msra.mxu0 %v816_v1 }
 0x33a   :  { %1360 = vmatprep.subr.mxu0 %v1472_v0 }
 0x33b   :  { %1361 = vmatpush3.msra.mxu0 %v815_v2 }
 0x33c   :  { %1362 = vmatprep.subr.mxu0 %v1472_v0 }
 0x33d   :  { %1363 = vmatpush3.msra.mxu0 %v814_v3 }
 0x33e   :  { %1364 = vmatprep.subr.mxu0 %v1472_v0 }
 0x33f   :  { %1365 = vmatpush3.msra.mxu0 %v813_v4 }
 0x340   :  { %1366 = vmatprep.subr.mxu0 %v1472_v0 }
 0x341   :  { %1367 = vmatpush3.msra.mxu0 %v812_v10 }
 0x342   :  { %1368 = vmatprep.subr.mxu0 %v1472_v0 }
 0x343   :  { %1369 = vmatpush3.msra.mxu0 %v811_v11 }
 0x344   :  { %1370 = vmatprep.subr.mxu0 %v1472_v0 }
 0x345   :  { %1371 = vmatpush3.msra.mxu0 %v810_v12 }
 0x346   :  { %1372 = vmatprep.subr.mxu0 %v1472_v0 }
 0x347   :  { %1373 = vmatpush3.msra.mxu0 %v809_v13 }
 0x348   :  { %1374 = vmatprep.subr.mxu0 %v1472_v0 }
 0x349   :  { %1375 = vmatpush3.msra.mxu0 %v808_v14 }
 0x34a   :  { %1376 = vmatprep.subr.mxu0 %v1472_v0 }
 0x3b4   :  { %v603_v48 = vpop.f32.mrf.mxu1 }
 0x3b6   :  { %v1283_v49 = vpop.f32.mrf.mxu1 }
 0x3d4   :  { %v533_v50 = vpop.f32.mrf.mxu0 }
 0x3d5   :  { %v1662_v51 = vadd.f32 %v603_v48, %v533_v50 }
 0x3d6   :  { %v1248_v52 = vpop.f32.mrf.mxu0 }
 0x3f4   :  { %v712_v54 = vpop.f32.mrf.mxu0 }
 0x3f5   :  { %v713_v55 = vadd.f32 %v918_v53, %v712_v54 }
 0x3f6   :  { %v1318_v56 = vpop.f32.mrf.mxu0 }
 0x3f7   :  { %v716_v57 = vmax.f32 %v713_v55, 0.0 }
 0x3f9   :  { %1352 = vmatmul.mubr.f32.vlgmr.msra.gmra.mxu1 %v716_v57 }
 0x4b9   :  { %v787_v59 = vpop.f32.mrf.mxu1 }
 0x4ba   :  { %v788_v60 = vadd.f32 %v919_v58, %v787_v59 }
 0x4bb   :  { %v1353_v61 = vpop.f32.mrf.mxu1 }
 0x4bc   :  { %791 = vadd.xlane.f32.xlu0 %v788_v60 }
 0x545   :  { %v792_v5 = vpop.xlane.xlu0 %791 }
 0x546   :  { %v793_v6 = vmul.f32 0.03125, %v792_v5 }
 0x548   :  { %v794_v7 = vsub.f32 %v788_v60, %v793_v6 }
 0x54a   :  { %v795_v8 = vmul.f32 %v1583_v31, %v794_v7  ;;  %v807_v31 = vld [vmem:[#allocation5 + $0x420] sm:$0xff] }
 0x54b   :  { %1377 = vmatpush3.msra.mxu0 %v807_v31 }
 0x54c   :  { %v796_v9 = vmul.f32 %v795_v8, %v795_v8  ;;  %1378 = vmatprep.subr.mxu0 %v1472_v0 }
 0x54d   :  { %1379 = vmatpush3.msra.mxu0 %v806_v15 }
 0x54e   :  { %797 = vadd.xlane.f32.xlu1 %v796_v9  ;;  %1380 = vmatprep.subr.mxu0 %v1472_v0 }
 0x54f   :  { %1381 = vmatpush3.msra.mxu0 %v805_v16 }
 0x550   :  { %1382 = vmatprep.subr.mxu0 %v1472_v0 }
 0x551   :  { %1383 = vmatpush3.msra.mxu0 %v804_v17 }
 0x552   :  { %1384 = vmatprep.subr.mxu0 %v1472_v0 }
 0x553   :  { %1385 = vmatpush3.msra.mxu0 %v803_v18 }
 0x5d7   :  { %v798_v19 = vpop.xlane.xlu1 %797 }
 0x5d8   :  { %v799_v20 = vmul.f32 0.03125, %v798_v19 }
 0x5da   :  { %v800_v21 = vadd.f32 1e-05, %v799_v20 }
 0x5dc   :  { %1400 = vrsqrt.f32 %v800_v21 }
 0x5e9   :  { %v1401_v22 = vpop.eup %1400 }
 0x5ea   :  { %v802_v23 = vmul.f32 %v1401_v22, %v795_v8 }
 0x5ec   :  { %1387 = vmatmul.mubr.f32.vlgmr.msra.gmra.mxu0 %v802_v23 }
 0x6ac   :  { %v885_v24 = vpop.f32.mrf.mxu0 }
 0x6ad   :  { %v889_v26 = vadd.f32 %v885_v24, %v1662_v51 }
 0x6ae   :  { %v1388_v27 = vpop.f32.mrf.mxu0 }
 0x6af   :  { %v895_v28 = vadd.f32 %v920_v25, %v889_v26 }
 0x6b1   :  { %896 = vst [vmem:[#allocation7] sm:$0xff] %v895_v28 }
 0x6b2   :  { %1453 = shalt.err (!%p1450_p0)
}
 0x6b3   :  { %906 = dma.vmem_to_hbm [thread:$0]  %s904_s1, 128, %s1686_s2, [#allocation4]  }
 0x6b4   :  { %1466 = dma.done.wait [#allocation4], 128  }
 0x6b5   :  { %1467 = vsyncadd [#allocation4], 4294967168 }
 0x6b6   :  { %910 = vsyncpa [#allocation3], 1 }
 0x6b7   :  { %911 = vsyncpa [#allocation6], 1 }
 0x6b8   :  { %912 = vsyncpa [#allocation4], 1 }

</bundles_post_ra>
